<compile_context>
chip_gen: v7x
topology: tpu7x:2x2x1
jax: 0.10.0
libtpu: 0.0.40
codegen_flags: <defaults>
</compile_context>

<pallas_src>
import functools

import jax
import jax.numpy as jnp
from jax.experimental import pallas as pl
from jax.experimental.pallas import tpu as pltpu

BN_EPS = 1e-5


# ---------------------------------------------------------------------------
# Hardware gating + tiling helpers
# ---------------------------------------------------------------------------
def _hw_caps():
    """Per-generation VMEM limit and tile caps (safe defaults if query fails)."""
    vmem_limit = 32 * 1024 * 1024
    tm_cap, tn_cap, tk_cap = 512, 256, 512
    try:
        info = pltpu.get_tpu_info()
        vmem_phys = getattr(info, "vmem_capacity_bytes", None)
        if vmem_phys is not None:
            if vmem_phys >= 96 * 1024 * 1024:      # v5e / v6e: 128 MiB VMEM
                vmem_limit = 96 * 1024 * 1024
                tm_cap, tn_cap, tk_cap = 1024, 512, 512
            else:                                   # v7x: 64 MiB physical
                vmem_limit = 40 * 1024 * 1024
                tm_cap, tn_cap, tk_cap = 512, 256, 512
    except Exception:
        pass
    return {"vmem_limit": vmem_limit, "tm_cap": tm_cap,
            "tn_cap": tn_cap, "tk_cap": tk_cap}


def _round_up(x, m):
    return ((x + m - 1) // m) * m


def _divisor_tile(dim, cap, align):
    t = min(cap, dim)
    t = (t // align) * align
    while t >= align:
        if dim % t == 0:
            return t
        t -= align
    return None


def _pick_tile(dim, cap, align):
    """Return (tile, padded_dim): full-extent tile when it fits, otherwise the
    largest aligned divisor <= cap, otherwise an aligned cap tile + row padding."""
    if dim <= cap:
        return dim, dim
    t = _divisor_tile(dim, cap, align)
    if t is not None:
        return t, dim
    t = (cap // align) * align
    return t, _round_up(dim, t)


def _pad_to(a, shape):
    pads = [(0, t - s) for s, t in zip(a.shape, shape)]
    return jnp.pad(a, pads)


def _mm_compiler_params(hw):
    return pltpu.CompilerParams(
        dimension_semantics=("parallel", "parallel", "arbitrary"),
        vmem_limit_bytes=hw["vmem_limit"])


# ---------------------------------------------------------------------------
# 1x1 conv kernels: tiled matmul, grid = (M/tm, N/tn, K steps), f32 VMEM acc.
# ---------------------------------------------------------------------------
def _mm_bias_kernel(relu, x_ref, w_ref, b_ref, o_ref, acc_ref):
    k = pl.program_id(2)

    @pl.when(k == 0)
    def _():
        acc_ref[...] = jnp.zeros_like(acc_ref)

    acc_ref[...] += jnp.dot(x_ref[...], w_ref[...],
                            preferred_element_type=jnp.float32)

    @pl.when(k == pl.num_programs(2) - 1)
    def _():
        r = acc_ref[...] + b_ref[...]
        if relu:
            r = jnp.maximum(r, 0.0)
        o_ref[...] = r.astype(o_ref.dtype)


def _mm_bias_res_kernel(x_ref, w_ref, b_ref, res_ref, o_ref, acc_ref):
    """matmul + bias + identity residual + ReLU."""
    k = pl.program_id(2)

    @pl.when(k == 0)
    def _():
        acc_ref[...] = jnp.zeros_like(acc_ref)

    acc_ref[...] += jnp.dot(x_ref[...], w_ref[...],
                            preferred_element_type=jnp.float32)

    @pl.when(k == pl.num_programs(2) - 1)
    def _():
        r = acc_ref[...] + b_ref[...] + res_ref[...].astype(jnp.float32)
        o_ref[...] = jnp.maximum(r, 0.0).astype(o_ref.dtype)


def _mm_bias_proj_kernel(k1_steps, x_ref, w_ref, xs_ref, ws_ref, b_ref,
                         o_ref, acc_ref):
    """matmul + bias + projection shortcut folded into the K grid axis + ReLU.

    Steps k < k1_steps contract the conv3 input; steps k >= k1_steps contract the
    shortcut input into the same f32 accumulator (both tiled & pipelined)."""
    k = pl.program_id(2)

    @pl.when(k == 0)
    def _():
        acc_ref[...] = jnp.zeros_like(acc_ref)

    @pl.when(k < k1_steps)
    def _():
        acc_ref[...] += jnp.dot(x_ref[...], w_ref[...],
                                preferred_element_type=jnp.float32)

    @pl.when(k >= k1_steps)
    def _():
        acc_ref[...] += jnp.dot(xs_ref[...], ws_ref[...],
                                preferred_element_type=jnp.float32)

    @pl.when(k == pl.num_programs(2) - 1)
    def _():
        o_ref[...] = jnp.maximum(acc_ref[...] + b_ref[...], 0.0).astype(o_ref.dtype)


def matmul_bias(x, w, b, *, relu, out_dtype, hw):
    M, K = x.shape
    N = w.shape[1]
    tm, m_pad = _pick_tile(M, hw["tm_cap"], 16)
    tn, _ = _pick_tile(N, hw["tn_cap"], 128)
    tk, _ = _pick_tile(K, hw["tk_cap"], 128)
    if m_pad != M:
        x = jnp.pad(x, ((0, m_pad - M), (0, 0)))
    grid = (m_pad // tm, N // tn, K // tk)
    out = pl.pallas_call(
        functools.partial(_mm_bias_kernel, relu),
        out_shape=jax.ShapeDtypeStruct((m_pad, N), out_dtype),
        grid_spec=pltpu.PrefetchScalarGridSpec(
            num_scalar_prefetch=0, grid=grid,
            in_specs=[pl.BlockSpec((tm, tk), lambda i, j, k: (i, k)),
                      pl.BlockSpec((tk, tn), lambda i, j, k: (k, j)),
                      pl.BlockSpec((1, tn), lambda i, j, k: (0, j))],
            out_specs=pl.BlockSpec((tm, tn), lambda i, j, k: (i, j)),
            scratch_shapes=[pltpu.VMEM((tm, tn), jnp.float32)]),
        compiler_params=_mm_compiler_params(hw),
    )(x, w, b)
    return out if m_pad == M else out[:M]


def matmul_bias_residual(x, w, b, res, *, out_dtype, hw):
    M, K = x.shape
    N = w.shape[1]
    tm, m_pad = _pick_tile(M, hw["tm_cap"], 16)
    tn, _ = _pick_tile(N, hw["tn_cap"], 128)
    tk, _ = _pick_tile(K, hw["tk_cap"], 128)
    if m_pad != M:
        x = jnp.pad(x, ((0, m_pad - M), (0, 0)))
        res = jnp.pad(res, ((0, m_pad - M), (0, 0)))
    grid = (m_pad // tm, N // tn, K // tk)
    out = pl.pallas_call(
        _mm_bias_res_kernel,
        out_shape=jax.ShapeDtypeStruct((m_pad, N), out_dtype),
        grid_spec=pltpu.PrefetchScalarGridSpec(
            num_scalar_prefetch=0, grid=grid,
            in_specs=[pl.BlockSpec((tm, tk), lambda i, j, k: (i, k)),
                      pl.BlockSpec((tk, tn), lambda i, j, k: (k, j)),
                      pl.BlockSpec((1, tn), lambda i, j, k: (0, j)),
                      pl.BlockSpec((tm, tn), lambda i, j, k: (i, j))],
            out_specs=pl.BlockSpec((tm, tn), lambda i, j, k: (i, j)),
            scratch_shapes=[pltpu.VMEM((tm, tn), jnp.float32)]),
        compiler_params=_mm_compiler_params(hw),
    )(x, w, b, res)
    return out if m_pad == M else out[:M]


def matmul_bias_projection(x, w, x_sc, w_sc, b, *, out_dtype, hw):
    M, K1 = x.shape
    K2 = x_sc.shape[1]
    N = w.shape[1]
    tm, m_pad = _pick_tile(M, hw["tm_cap"], 16)
    tn, _ = _pick_tile(N, hw["tn_cap"], 128)
    tk1, _ = _pick_tile(K1, hw["tk_cap"], 128)
    tk2, _ = _pick_tile(K2, hw["tk_cap"], 128)
    k1_steps = K1 // tk1
    k2_steps = K2 // tk2
    if m_pad != M:
        x = jnp.pad(x, ((0, m_pad - M), (0, 0)))
        x_sc = jnp.pad(x_sc, ((0, m_pad - M), (0, 0)))
    grid = (m_pad // tm, N // tn, k1_steps + k2_steps)
    # During the "other" phase each input's index map repeats its last block index,
    # so Pallas skips the re-DMA (no wasted bandwidth on the inactive operand).
    out = pl.pallas_call(
        functools.partial(_mm_bias_proj_kernel, k1_steps),
        out_shape=jax.ShapeDtypeStruct((m_pad, N), out_dtype),
        grid_spec=pltpu.PrefetchScalarGridSpec(
            num_scalar_prefetch=0, grid=grid,
            in_specs=[
                pl.BlockSpec((tm, tk1),
                             lambda i, j, k: (i, jnp.minimum(k, k1_steps - 1))),
                pl.BlockSpec((tk1, tn),
                             lambda i, j, k: (jnp.minimum(k, k1_steps - 1), j)),
                pl.BlockSpec((tm, tk2),
                             lambda i, j, k: (i, jnp.maximum(k - k1_steps, 0))),
                pl.BlockSpec((tk2, tn),
                             lambda i, j, k: (jnp.maximum(k - k1_steps, 0), j)),
                pl.BlockSpec((1, tn), lambda i, j, k: (0, j))],
            out_specs=pl.BlockSpec((tm, tn), lambda i, j, k: (i, j)),
            scratch_shapes=[pltpu.VMEM((tm, tn), jnp.float32)]),
        compiler_params=_mm_compiler_params(hw),
    )(x, w, x_sc, w_sc, b)
    return out if m_pad == M else out[:M]


# ---------------------------------------------------------------------------
# conv2: 3x3, stride s, padding 1 — spatially tiled, contiguous-tap kernel.
#
# The padded input is phase-decomposed by stride and each phase is flattened with
# row stride Wph (= Wo + 2//s).  The output is computed on the same flattened grid
# (Ho*Wph rows, the extra columns are garbage and sliced off in the wrapper), so
# tap (kh, kw) is simply rows [q + d, q + d + tm) of phase (kh%s, kw%s) with
# d = (kh//s)*Wph + (kw//s): contiguous sublane windows, no strided W slices.
# ---------------------------------------------------------------------------
def _conv3x3_kernel(stride, wph, cp, use_concat, x_ref, w_ref, b_ref, o_ref, acc_ref):
    s = stride
    tm = o_ref.shape[1]
    base = pl.multiple_of(pl.program_id(1) * tm, 8)

    taps = []
    for kh in range(3):
        for kw in range(3):
            ph = (kh % s) * s + (kw % s)
            d = (kh // s) * wph + (kw // s)
            taps.append((ph, d))

    if use_concat:
        # Thin channels: stack the 9 taps along K -> one big-K MXU matmul.
        xcat = jnp.concatenate(
            [x_ref[0, ph, pl.ds(base + d, tm), :] for ph, d in taps], axis=-1)
        acc_ref[...] = jnp.dot(xcat, w_ref[...], preferred_element_type=jnp.float32)
    else:
        # Wide channels: 9 accumulated matmuls into the f32 VMEM scratch.
        for idx, (ph, d) in enumerate(taps):
            xt = x_ref[0, ph, pl.ds(base + d, tm), :]
            wt = w_ref[idx * cp:(idx + 1) * cp, :]
            part = jnp.dot(xt, wt, preferred_element_type=jnp.float32)
            if idx == 0:
                acc_ref[...] = part
            else:
                acc_ref[...] += part

    o_ref[0] = jnp.maximum(acc_ref[...] + b_ref[...], 0.0).astype(o_ref.dtype)


def conv3x3_bn_relu(x, w2, b2, stride, *, out_dtype, hw):
    # x: (N, H, W, Cp) bf16, channels already padded to a multiple of 128.
    n, h, w, cp = x.shape
    coutp = w2.shape[-1]
    s = stride
    ho = (h - 1) // s + 1
    wo = (w - 1) // s + 1
    e = 2 // s                      # max extra tap offset per axis
    wph = wo + e                    # flattened row stride (valid + garbage cols)
    hreq = ho + e
    m_img = ho * wph                # output rows per image (incl. garbage cols)

    tm, m_pad = _pick_tile(m_img, min(hw["tm_cap"], 512), 16)
    m_blocks = m_pad // tm
    d_max = e * wph + e
    l_in = _round_up(m_pad + d_max, 8)

    # TODO(synk): longer term, express the halo via element-offset index_maps on the
    # unpadded out1 to remove this single pad/phase re-layout pass entirely.
    xp = jnp.pad(x, ((0, 0), (1, 1), (1, 1), (0, 0)))
    phases = []
    for pr in range(s):
        for pc in range(s):
            phx = xp[:, pr::s, pc::s, :][:, :hreq, :wph, :]
            if phx.shape[1] != hreq or phx.shape[2] != wph:
                phx = jnp.pad(phx, ((0, 0), (0, hreq - phx.shape[1]),
                                    (0, wph - phx.shape[2]), (0, 0)))
            phases.append(phx.reshape(n, hreq * wph, cp))
    xph = jnp.stack(phases, axis=1)                       # (n, s*s, hreq*wph, cp)
    xph = jnp.pad(xph, ((0, 0), (0, 0), (0, l_in - hreq * wph), (0, 0)))

    use_concat = cp <= 128
    out = pl.pallas_call(
        functools.partial(_conv3x3_kernel, s, wph, cp, use_concat),
        out_shape=jax.ShapeDtypeStruct((n, m_pad, coutp), out_dtype),
        grid_spec=pltpu.PrefetchScalarGridSpec(
            num_scalar_prefetch=0, grid=(n, m_blocks),
            in_specs=[pl.BlockSpec((1, s * s, l_in, cp), lambda b, m: (b, 0, 0, 0)),
                      pl.BlockSpec((9 * cp, coutp), lambda b, m: (0, 0)),
                      pl.BlockSpec((1, coutp), lambda b, m: (0, 0))],
            out_specs=pl.BlockSpec((1, tm, coutp), lambda b, m: (b, m, 0)),
            scratch_shapes=[pltpu.VMEM((tm, coutp), jnp.float32)]),
        compiler_params=pltpu.CompilerParams(
            dimension_semantics=("parallel", "parallel"),
            vmem_limit_bytes=hw["vmem_limit"]),
    )(xph, w2, b2)

    out = out[:, :m_img, :].reshape(n, ho, wph, coutp)[:, :, :wo, :]
    return out, ho, wo


# ---------------------------------------------------------------------------
# Parameters (deterministic, synthetic).  BN scale is folded into the weights.
# ---------------------------------------------------------------------------
def fold_bn(gamma, beta, mean, var):
    scale = gamma / jnp.sqrt(var + BN_EPS)
    bias = beta - mean * scale
    return scale, bias


def init_params(key, in_planes, planes, stride):
    out_planes = 4 * planes
    keys = jax.random.split(key, 8)

    def w_init(k, shape):
        fan_in = 1
        for d in shape[:-1]:
            fan_in *= d
        return jax.random.normal(k, shape, jnp.float32) / jnp.sqrt(fan_in)

    def bn_init(k, c):
        k1, k2, k3, k4 = jax.random.split(k, 4)
        gamma = 1.0 + 0.1 * jax.random.normal(k1, (c,), jnp.float32)
        beta = 0.1 * jax.random.normal(k2, (c,), jnp.float32)
        mean = 0.1 * jax.random.normal(k3, (c,), jnp.float32)
        var = 1.0 + 0.1 * jax.random.uniform(k4, (c,), jnp.float32)
        return fold_bn(gamma, beta, mean, var)

    p = {}
    w1 = w_init(keys[0], (in_planes, planes))
    s1, b1 = bn_init(keys[1], planes)
    p["w1"], p["b1"] = w1 * s1[None, :], b1[None, :]

    w2 = w_init(keys[2], (3, 3, planes, planes))            # HWIO
    s2, b2 = bn_init(keys[3], planes)
    p["w2"], p["b2"] = w2 * s2[None, None, None, :], b2[None, :]

    w3 = w_init(keys[4], (planes, out_planes))
    s3, b3 = bn_init(keys[5], out_planes)
    p["w3"], p["b3"] = w3 * s3[None, :], b3[None, :]

    p["has_shortcut"] = (stride != 1) or (in_planes != out_planes)
    if p["has_shortcut"]:
        wsc = w_init(keys[6], (in_planes, out_planes))
        ssc, bsc = bn_init(keys[7], out_planes)
        p["wsc"], p["bsc"] = wsc * ssc[None, :], bsc[None, :]
    return p


# ---------------------------------------------------------------------------
# Bottleneck forward
# ---------------------------------------------------------------------------
def bottleneck_forward(x_nchw, params, stride):
    hw = _hw_caps()
    n, cin, h, w = x_nchw.shape
    planes = params["w1"].shape[1]
    out_planes = 4 * planes
    cin_p = _round_up(cin, 128)
    planes_p = _round_up(planes, 128)
    outp_p = _round_up(out_planes, 128)

    # bf16 cast BEFORE the layout transpose; zero-pad channels to lane multiples.
    xb = jnp.transpose(x_nchw.astype(jnp.bfloat16), (0, 2, 3, 1))   # NCHW -> NHWC
    if cin_p != cin:
        xb = jnp.pad(xb, ((0, 0), (0, 0), (0, 0), (0, cin_p - cin)))

    # conv1 (1x1) + bn1 + relu
    w1 = _pad_to(params["w1"], (cin_p, planes_p)).astype(jnp.bfloat16)
    b1 = _pad_to(params["b1"], (1, planes_p))
    out1 = matmul_bias(xb.reshape(n * h * w, cin_p), w1, b1,
                       relu=True, out_dtype=jnp.bfloat16, hw=hw)
    out1 = out1.reshape(n, h, w, planes_p)

    # conv2 (3x3, stride, pad=1) + bn2 + relu
    w2 = _pad_to(params["w2"], (3, 3, planes_p, planes_p))
    w2 = w2.reshape(9 * planes_p, planes_p).astype(jnp.bfloat16)
    b2 = _pad_to(params["b2"], (1, planes_p))
    out2, ho, wo = conv3x3_bn_relu(out1, w2, b2, stride,
                                   out_dtype=jnp.bfloat16, hw=hw)
    out2 = out2.reshape(n * ho * wo, planes_p)

    # conv3 (1x1) + bn3 + shortcut + relu (single fused kernel)
    w3 = _pad_to(params["w3"], (planes_p, outp_p)).astype(jnp.bfloat16)
    b3 = _pad_to(params["b3"], (1, outp_p))
    if params["has_shortcut"]:
        wsc = _pad_to(params["wsc"], (cin_p, outp_p)).astype(jnp.bfloat16)
        bsc = _pad_to(params["bsc"], (1, outp_p))
        # TODO(synk): the strided subsample could be expressed via an element-offset
        # index_map instead of this small wrapper-level slice copy.
        x_sc = xb[:, ::stride, ::stride, :].reshape(n * ho * wo, cin_p)
        out3 = matmul_bias_projection(out2, w3, x_sc, wsc, b3 + bsc,
                                      out_dtype=jnp.float32, hw=hw)
    else:
        res = xb.reshape(n * h * w, cin_p)   # identity: cin == 4*planes, stride == 1
        out3 = matmul_bias_residual(out2, w3, b3, res,
                                    out_dtype=jnp.float32, hw=hw)

    out = out3.reshape(n, ho, wo, outp_p)[..., :out_planes]
    return jnp.transpose(out, (0, 3, 1, 2))                         # NHWC -> NCHW


# Pure-JAX f32 reference (same folded, unpadded params) for a numerical check.
def ref_forward(x_nchw, params, stride):
    x = jnp.transpose(x_nchw, (0, 2, 3, 1)).astype(jnp.float32)
    out1 = jax.nn.relu(jnp.einsum("nhwc,cd->nhwd", x, params["w1"]) + params["b1"])
    out2 = jax.lax.conv_general_dilated(
        out1, params["w2"], window_strides=(stride, stride), padding=((1, 1), (1, 1)),
        dimension_numbers=("NHWC", "HWIO", "NHWC"))
    out2 = jax.nn.relu(out2 + params["b2"])
    out3 = jnp.einsum("nhwc,cd->nhwd", out2, params["w3"]) + params["b3"]
    if params["has_shortcut"]:
        xs = x[:, ::stride, ::stride, :]
        sc = jnp.einsum("nhwc,cd->nhwd", xs, params["wsc"]) + params["bsc"]
    else:
        sc = x
    out = jax.nn.relu(out3 + sc)
    return jnp.transpose(out, (0, 3, 1, 2))


if __name__ == "__main__":
    key = jax.random.PRNGKey(0)
    configs = [
        # projection shortcut (stride 2) and identity shortcut (stride 1, cin == 4*planes)
        dict(batch=2, in_planes=64, planes=32, spatial=16, stride=2),
        dict(batch=2, in_planes=128, planes=32, spatial=16, stride=1),
    ]
    for i, cfg in enumerate(configs):
        kx, kp = jax.random.split(jax.random.fold_in(key, i))
        x = jax.random.normal(
            kx, (cfg["batch"], cfg["in_planes"], cfg["spatial"], cfg["spatial"]),
            jnp.float32)
        params = init_params(kp, cfg["in_planes"], cfg["planes"], cfg["stride"])

        out = jax.block_until_ready(bottleneck_forward(x, params, cfg["stride"]))
        ref = jax.block_until_ready(ref_forward(x, params, cfg["stride"]))

        so = (cfg["spatial"] - 1) // cfg["stride"] + 1
        expected = (cfg["batch"], 4 * cfg["planes"], so, so)
        assert out.shape == expected, (out.shape, expected)
        assert bool(jnp.all(out >= 0.0)), "final ReLU violated"
        max_err = float(jnp.max(jnp.abs(out - ref)))
        assert max_err < 0.2, f"config {i}: max abs err {max_err}"
    print("KERNEL_OK")
</pallas_src>

<mosaic_0001>
module attributes {stable_mosaic.version = 11 : i64} {
  func.func @_mm_bias_kernel(%arg0: i32, %arg1: i32, %arg2: i32, %arg3: memref<512x128xbf16, #tpu.memory_space<vmem>>, %arg4: memref<128x128xbf16, #tpu.memory_space<vmem>>, %arg5: memref<1x128xf32, #tpu.memory_space<vmem>>, %arg6: memref<512x128xbf16, #tpu.memory_space<vmem>>, %arg7: memref<512x128xf32, #tpu.memory_space<vmem>>) attributes {dimension_semantics = [#tpu.dimension_semantics<parallel>, #tpu.dimension_semantics<parallel>, #tpu.dimension_semantics<arbitrary>], iteration_bounds = array<i64: 1, 1, 1>, scalar_prefetch = 0 : i64, scratch_operands = 1 : i64, tpu.core_type = #tpu.core_type<tc>, window_params = [{transform_indices = @transform_0, window_bounds = array<i64: 512, 128>}, {transform_indices = @transform_1, window_bounds = array<i64: 128, 128>}, {transform_indices = @transform_2, window_bounds = array<i64: 1, 128>}, {transform_indices = @transform_3, window_bounds = array<i64: 512, 128>}]} {
    %c0_i32 = arith.constant 0 : i32
    %0 = arith.cmpi eq, %arg2, %c0_i32 : i32
    %1 = arith.extui %0 : i1 to i32
    %c0_i32_0 = arith.constant 0 : i32
    %2 = arith.cmpi ne, %1, %c0_i32_0 : i32
    scf.if %2 {
      %cst_10 = arith.constant 0.000000e+00 : f32
      %12 = vector.broadcast %cst_10 : f32 to vector<512x128xf32>
      %c0_11 = arith.constant 0 : index
      %c0_12 = arith.constant 0 : index
      %13 = vector.load %arg7[%c0_11, %c0_12] : memref<512x128xf32, #tpu.memory_space<vmem>>, vector<512x128xf32>
      tpu.vector_store %arg7[%c0_11, %c0_12], %12 {strides = array<i32>} : memref<512x128xf32, #tpu.memory_space<vmem>>, vector<512x128xf32>,
    } else {
    }
    %c0 = arith.constant 0 : index
    %c0_1 = arith.constant 0 : index
    %3 = vector.load %arg7[%c0, %c0_1] : memref<512x128xf32, #tpu.memory_space<vmem>>, vector<512x128xf32>
    %c0_2 = arith.constant 0 : index
    %c0_3 = arith.constant 0 : index
    %4 = vector.load %arg3[%c0_2, %c0_3] : memref<512x128xbf16, #tpu.memory_space<vmem>>, vector<512x128xbf16>
    %c0_4 = arith.constant 0 : index
    %c0_5 = arith.constant 0 : index
    %5 = vector.load %arg4[%c0_4, %c0_5] : memref<128x128xbf16, #tpu.memory_space<vmem>>, vector<128x128xbf16>
    %cst = arith.constant dense<0.000000e+00> : vector<512x128xf32>
    %6 = tpu.matmul %4, %5, %cst {dimension_numbers = #tpu.dot_dimension_numbers<[1], [0], [0], [1], [0, 0, 1, 1], [], []>} : vector<512x128xbf16>, vector<128x128xbf16>, vector<512x128xf32> -> vector<512x128xf32>
    %7 = arith.addf %3, %6 : vector<512x128xf32>
    %c0_6 = arith.constant 0 : index
    %c0_7 = arith.constant 0 : index
    %8 = vector.load %arg7[%c0_6, %c0_7] : memref<512x128xf32, #tpu.memory_space<vmem>>, vector<512x128xf32>
    tpu.vector_store %arg7[%c0_6, %c0_7], %7 {strides = array<i32>} : memref<512x128xf32, #tpu.memory_space<vmem>>, vector<512x128xf32>,
    %c0_i32_8 = arith.constant 0 : i32
    %9 = arith.cmpi eq, %arg2, %c0_i32_8 : i32
    %10 = arith.extui %9 : i1 to i32
    %c0_i32_9 = arith.constant 0 : i32
    %11 = arith.cmpi ne, %10, %c0_i32_9 : i32
    scf.if %11 {
      %c0_10 = arith.constant 0 : index
      %c0_11 = arith.constant 0 : index
      %12 = vector.load %arg7[%c0_10, %c0_11] : memref<512x128xf32, #tpu.memory_space<vmem>>, vector<512x128xf32>
      %c0_12 = arith.constant 0 : index
      %c0_13 = arith.constant 0 : index
      %13 = vector.load %arg5[%c0_12, %c0_13] : memref<1x128xf32, #tpu.memory_space<vmem>>, vector<1x128xf32>
      %14 = vector.broadcast %13 : vector<1x128xf32> to vector<512x128xf32>
      %15 = arith.addf %12, %14 : vector<512x128xf32>
      %cst_14 = arith.constant 0.000000e+00 : f32
      %16 = vector.broadcast %cst_14 : f32 to vector<512x128xf32>
      %17 = arith.maximumf %15, %16 : vector<512x128xf32>
      %18 = arith.truncf %17 : vector<512x128xf32> to vector<512x128xbf16>
      %c0_15 = arith.constant 0 : index
      %c0_16 = arith.constant 0 : index
      %19 = vector.load %arg6[%c0_15, %c0_16] : memref<512x128xbf16, #tpu.memory_space<vmem>>, vector<512x128xbf16>
      tpu.vector_store %arg6[%c0_15, %c0_16], %18 {strides = array<i32>} : memref<512x128xbf16, #tpu.memory_space<vmem>>, vector<512x128xbf16>,
    } else {
    }
    return
  }
  func.func @transform_0(%arg0: i32, %arg1: i32, %arg2: i32) -> (i32, i32) {
    %c0_i32 = arith.constant 0 : i32
    return %arg0, %arg2 : i32, i32
  }
  func.func @transform_1(%arg0: i32, %arg1: i32, %arg2: i32) -> (i32, i32) {
    %c0_i32 = arith.constant 0 : i32
    return %arg2, %arg1 : i32, i32
  }
  func.func @transform_2(%arg0: i32, %arg1: i32, %arg2: i32) -> (i32, i32) {
    %c0_i32 = arith.constant 0 : i32
    %c0_i32_0 = arith.constant 0 : i32
    return %c0_i32, %arg1 : i32, i32
  }
  func.func @transform_3(%arg0: i32, %arg1: i32, %arg2: i32) -> (i32, i32) {
    %c0_i32 = arith.constant 0 : i32
    return %arg0, %arg1 : i32, i32
  }
}

</mosaic_0001>

<bundles_post_ra>
// kernel: tpu_custom_call.1
= control target key start
LH: loop header
LB: loop body
LE: loop exit
PB: predicated region body
PF: predicated region fallthrough
CT: control target
= control target key end

     0   :  { %8 = vsyncpa [#allocation4], 0  ;;  %s2205_s0 = inlined_call_operand.hbm [shape: bf16[512,128], index: 0, kind: input, shape index: {}]   ;;  %s2206_s1 = inlined_call_operand.hbm [shape: bf16[128,128], index: 1, kind: input, shape index: {}]   ;;  %s2207_s2 = inlined_call_operand.vmem [shape: f32[1,128], index: 2, kind: input, shape index: {}]   ;;  %s2208_s3 = inlined_call_operand.hbm [shape: bf16[512,128], index: 3, kind: output, shape index: {}]  }
   0x1   :  { %9 = vsyncpa [#allocation7], 0 }
   0x2   :  { %10 = vsyncpa [#allocation5], 0  ;;  %s2066_s12 = smov [#allocation3]   ;;  %s1994_s16 = scalar_lea.hbm %s2205_s0, 4096 }
   0x3   :  { %s16_s13 = sshll.u32 %s2066_s12, 4  ;;  %p1995_p0 = scmp.ne.s32.totalorder %s2205_s0, %s1994_s16  ;;  %s17_s13 = int_to_ptr.vmem [resolvable:$true] %s16_s13 }
   0x4   :  { %p1998_p1 = scmp.lt.u32.totalorder %s1994_s16, %s2205_s0 }
   0x6   :  { %p2000_p2 = pnand %p1998_p1, %p1995_p0 }
   0x8   :  { %2003 = shalt.err (!%p2000_p2)
}
   0x9   :  { %s2004_s21 = scalar_lea.vmem %s17_s13, 4096  ;;  %p2009_p4 = scmp.lt.s32.totalorder %s17_s13, %s17_s13 }
   0xa   :  { %p2005_p3 = scmp.ne.s32.totalorder %s17_s13, %s2004_s21  ;;  %p2010_p5 = scmp.lt.s32.totalorder %s2004_s21, %s2004_s21 }
   0xc   :  { %p2011_p6 = por %p2010_p5, %p2009_p4 }
   0xe   :  { %p2012_p7 = pnand %p2011_p6, %p2005_p3 }
  0x10   :  { %2015 = shalt.err (!%p2012_p7)
}
  0x11   :  { %s2067_s22 = smov 64   ;;  %s2068_s23 = smov 4  }
  0x12   :  { %22 = dma.hbm_to_vmem [thread:$0]  %s2205_s0, 4096, %s17_s13, [#allocation4], %s2067_s22, %s2067_s22, %s2068_s23  }
  0x13   :  { %s2069_s26 = smov [#allocation6]   ;;  %s2016_s30 = scalar_lea.hbm %s2206_s1, 1024 }
  0x14   :  { %s28_s27 = sshll.u32 %s2069_s26, 4  ;;  %p2017_p8 = scmp.ne.s32.totalorder %s2206_s1, %s2016_s30  ;;  %s29_s27 = int_to_ptr.vmem [resolvable:$true] %s28_s27 }
  0x15   :  { %p2020_p9 = scmp.lt.u32.totalorder %s2016_s30, %s2206_s1 }
  0x17   :  { %p2022_p10 = pnand %p2020_p9, %p2017_p8 }
  0x19   :  { %2025 = shalt.err (!%p2022_p10)
}
  0x1a   :  { %s2026_s8 = scalar_lea.vmem %s29_s27, 1024  ;;  %p2031_p12 = scmp.lt.s32.totalorder %s29_s27, %s29_s27 }
  0x1b   :  { %p2027_p11 = scmp.ne.s32.totalorder %s29_s27, %s2026_s8  ;;  %p2032_p13 = scmp.lt.s32.totalorder %s2026_s8, %s2026_s8 }
  0x1d   :  { %p2033_p0 = por %p2032_p13, %p2031_p12 }
  0x1f   :  { %p2034_p1 = pnand %p2033_p0, %p2027_p11 }
  0x21   :  { %2037 = shalt.err (!%p2034_p1)
}
  0x22   :  { %34 = dma.hbm_to_vmem [thread:$0]  %s2206_s1, 1024, %s29_s27, [#allocation7], %s2067_s22, %s2067_s22, %s2068_s23  }
  0x23   :  { %2060 = dma.done.wait [#allocation4], 4096  }
  0x24   :  { %2061 = vsyncadd [#allocation4], 4294963200 }
  0x25   :  { %2062 = dma.done.wait [#allocation7], 1024  }
  0x26   :  { %2063 = vsyncadd [#allocation7], 4294966272  ;;  %v1954_v0 = vld [vmem:[#allocation6] sm:$0xff]   ;;  %v1955_v1 = vld [vmem:[#allocation6 + $0x8] sm:$0xff]  }
  0x27   :  { %1853 = vmatprep.subr.bf16.mxu0 %v1954_v0  ;;  %1933 = vmatprep.subr.bf16.mxu1 %v1954_v0  ;;  %v1956_v2 = vld [vmem:[#allocation6 + $0x10] sm:$0xff]   ;;  %v1957_v3 = vld [vmem:[#allocation6 + $0x18] sm:$0xff]   ;;  %v1962_v4 = vld [vmem:[#allocation3] sm:$0xff]  }
  0x28   :  { %1854 = vmatpush3.bf16.msra.mxu0 %v1954_v0  ;;  %1941 = vmatpush3.bf16.msra.mxu1 %v1954_v0  ;;  %v1963_v5 = vld [vmem:[#allocation3 + $0x80] sm:$0xff]   ;;  %v1959_v7 = vld [vmem:[#allocation6 + $0x28] sm:$0xff]   ;;  %v1960_v8 = vld [vmem:[#allocation6 + $0x30] sm:$0xff]  }
  0x29   :  { %1855 = vmatprep.subr.bf16.mxu0 %v1955_v1  ;;  %1934 = vmatprep.subr.bf16.mxu1 %v1955_v1  ;;  %v1958_v6 = vld [vmem:[#allocation6 + $0x20] sm:$0xff]   ;;  %v1961_v9 = vld [vmem:[#allocation6 + $0x38] sm:$0xff]   ;;  %v1964_v10 = vld [vmem:[#allocation3 + $0x8] sm:$0xff]  }
  0x2a   :  { %1869 = vmatprep.mubr.bf16.mxu0 %v1962_v4  ;;  %1901 = vmatprep.mubr.bf16.mxu1 %v1963_v5  ;;  %v1965_v11 = vld [vmem:[#allocation3 + $0x88] sm:$0xff]   ;;  %v1966_v12 = vld [vmem:[#allocation3 + $0x10] sm:$0xff]   ;;  %v1968_v14 = vld [vmem:[#allocation3 + $0x18] sm:$0xff]  }
  0x2b   :  { %v1967_v13 = vld [vmem:[#allocation3 + $0x90] sm:$0xff]   ;;  %v1969_v15 = vld [vmem:[#allocation3 + $0x98] sm:$0xff]   ;;  %v1970_v16 = vld [vmem:[#allocation3 + $0x20] sm:$0xff]  }
  0x2c   :  { %1856 = vmatpush3.bf16.msra.mxu0 %v1955_v1  ;;  %1942 = vmatpush3.bf16.msra.mxu1 %v1955_v1  ;;  %v1971_v17 = vld [vmem:[#allocation3 + $0xa0] sm:$0xff]   ;;  %v1972_v18 = vld [vmem:[#allocation3 + $0x28] sm:$0xff]   ;;  %v1974_v20 = vld [vmem:[#allocation3 + $0x30] sm:$0xff]  }
  0x2d   :  { %1857 = vmatprep.subr.bf16.mxu0 %v1956_v2  ;;  %1935 = vmatprep.subr.bf16.mxu1 %v1956_v2  ;;  %v1973_v19 = vld [vmem:[#allocation3 + $0xa8] sm:$0xff]   ;;  %v1975_v21 = vld [vmem:[#allocation3 + $0xb0] sm:$0xff]   ;;  %v1976_v22 = vld [vmem:[#allocation3 + $0x38] sm:$0xff]  }
  0x2e   :  { %v1977_v23 = vld [vmem:[#allocation3 + $0xb8] sm:$0xff]   ;;  %v1978_v24 = vld [vmem:[#allocation3 + $0x40] sm:$0xff]   ;;  %v1980_v26 = vld [vmem:[#allocation3 + $0x48] sm:$0xff]  }
  0x2f   :  { %v1979_v25 = vld [vmem:[#allocation3 + $0xc0] sm:$0xff]   ;;  %v1981_v27 = vld [vmem:[#allocation3 + $0xc8] sm:$0xff]   ;;  %v1982_v28 = vld [vmem:[#allocation3 + $0x50] sm:$0xff]  }
  0x30   :  { %1858 = vmatpush3.bf16.msra.mxu0 %v1956_v2  ;;  %1943 = vmatpush3.bf16.msra.mxu1 %v1956_v2  ;;  %v1983_v29 = vld [vmem:[#allocation3 + $0xd0] sm:$0xff]   ;;  %v1984_v30 = vld [vmem:[#allocation3 + $0x58] sm:$0xff]   ;;  %v1986_v32 = vld [vmem:[#allocation3 + $0x60] sm:$0xff]  }
  0x31   :  { %1859 = vmatprep.subr.bf16.mxu0 %v1957_v3  ;;  %1936 = vmatprep.subr.bf16.mxu1 %v1957_v3  ;;  %v1985_v31 = vld [vmem:[#allocation3 + $0xd8] sm:$0xff]   ;;  %v1987_v33 = vld [vmem:[#allocation3 + $0xe0] sm:$0xff]   ;;  %v1988_v34 = vld [vmem:[#allocation3 + $0x68] sm:$0xff]  }
  0x32   :  { %v1989_v35 = vld [vmem:[#allocation3 + $0xe8] sm:$0xff]   ;;  %v1990_v36 = vld [vmem:[#allocation3 + $0x70] sm:$0xff]   ;;  %v1992_v38 = vld [vmem:[#allocation3 + $0x78] sm:$0xff]  }
  0x33   :  { %v1991_v37 = vld [vmem:[#allocation3 + $0xf0] sm:$0xff]   ;;  %v1993_v39 = vld [vmem:[#allocation3 + $0xf8] sm:$0xff]   ;;  %v2124_v40 = vld [vmem:[%s2207_s2] ss:$0 sm:$0xff]  ;;  %s2070_s2 = smov [#allocation8]  }
  0x34   :  { %1860 = vmatpush3.bf16.msra.mxu0 %v1957_v3  ;;  %1944 = vmatpush3.bf16.msra.mxu1 %v1957_v3  ;;  %s1440_s11 = sshll.u32 %s2070_s2, 4  ;;  %s1441_s11 = int_to_ptr.vmem [resolvable:$true] %s1440_s11 }
  0x35   :  { %1861 = vmatprep.subr.bf16.mxu0 %v1958_v6  ;;  %1937 = vmatprep.subr.bf16.mxu1 %v1958_v6  ;;  %s2038_s12 = scalar_lea.vmem %s1441_s11, 4096  ;;  %p2043_p3 = scmp.lt.s32.totalorder %s1441_s11, %s1441_s11 }
  0x36   :  { %p2039_p2 = scmp.ne.s32.totalorder %s1441_s11, %s2038_s12  ;;  %p2044_p4 = scmp.lt.s32.totalorder %s2038_s12, %s2038_s12 }
  0x38   :  { %1862 = vmatpush3.bf16.msra.mxu0 %v1958_v6  ;;  %1945 = vmatpush3.bf16.msra.mxu1 %v1958_v6  ;;  %p2045_p5 = por %p2044_p4, %p2043_p3 }
  0x39   :  { %1863 = vmatprep.subr.bf16.mxu0 %v1959_v7  ;;  %1938 = vmatprep.subr.bf16.mxu1 %v1959_v7 }
  0x3a   :  { %p2046_p6 = pnand %p2045_p5, %p2039_p2 }
  0x3c   :  { %1864 = vmatpush3.bf16.msra.mxu0 %v1959_v7  ;;  %1946 = vmatpush3.bf16.msra.mxu1 %v1959_v7 }
  0x3d   :  { %1865 = vmatprep.subr.bf16.mxu0 %v1960_v8  ;;  %1939 = vmatprep.subr.bf16.mxu1 %v1960_v8 }
  0x40   :  { %1866 = vmatpush3.bf16.msra.mxu0 %v1960_v8  ;;  %1947 = vmatpush3.bf16.msra.mxu1 %v1960_v8 }
  0x41   :  { %1867 = vmatprep.subr.bf16.mxu0 %v1961_v9  ;;  %1940 = vmatprep.subr.bf16.mxu1 %v1961_v9 }
  0x44   :  { %1868 = vmatpush3.bf16.msra.mxu0 %v1961_v9  ;;  %1948 = vmatpush3.bf16.msra.mxu1 %v1961_v9 }
  0x47   :  { %1870 = vmatmul.mubr.bf16.vlgmr.msra.gmra.mrb[0].mxu0 %v1964_v10  ;;  %1902 = vmatmul.mubr.bf16.vlgmr.msra.gmra.mrb[0].mxu1 %v1965_v11 }
  0x48   :  { %1873 = vmatprep.mubr.bf16.mxu0 %v1966_v12  ;;  %1905 = vmatprep.mubr.bf16.mxu1 %v1967_v13 }
  0x4f   :  { %1874 = vmatmul.mubr.bf16.gmra.mrb[4].mxu0 %v1968_v14  ;;  %1906 = vmatmul.mubr.bf16.gmra.mrb[4].mxu1 %v1969_v15 }
  0x50   :  { %1877 = vmatprep.mubr.bf16.mxu0 %v1970_v16  ;;  %1909 = vmatprep.mubr.bf16.mxu1 %v1971_v17 }
  0x57   :  { %1878 = vmatmul.mubr.bf16.gmra.mrb[8].mxu0 %v1972_v18  ;;  %1910 = vmatmul.mubr.bf16.gmra.mrb[8].mxu1 %v1973_v19 }
  0x58   :  { %1881 = vmatprep.mubr.bf16.mxu0 %v1974_v20  ;;  %1913 = vmatprep.mubr.bf16.mxu1 %v1975_v21 }
  0x5f   :  { %1882 = vmatmul.mubr.bf16.gmra.mrb[12].mxu0 %v1976_v22  ;;  %1914 = vmatmul.mubr.bf16.gmra.mrb[12].mxu1 %v1977_v23 }
  0x60   :  { %1885 = vmatprep.mubr.bf16.mxu0 %v1978_v24  ;;  %1917 = vmatprep.mubr.bf16.mxu1 %v1979_v25 }
  0x67   :  { %1886 = vmatmul.mubr.bf16.gmra.mrb[16].mxu0 %v1980_v26  ;;  %1918 = vmatmul.mubr.bf16.gmra.mrb[16].mxu1 %v1981_v27 }
  0x68   :  { %1889 = vmatprep.mubr.bf16.mxu0 %v1982_v28  ;;  %1921 = vmatprep.mubr.bf16.mxu1 %v1983_v29 }
  0x6f   :  { %1890 = vmatmul.mubr.bf16.gmra.mrb[20].mxu0 %v1984_v30  ;;  %1922 = vmatmul.mubr.bf16.gmra.mrb[20].mxu1 %v1985_v31 }
  0x70   :  { %1893 = vmatprep.mubr.bf16.mxu0 %v1986_v32  ;;  %1925 = vmatprep.mubr.bf16.mxu1 %v1987_v33 }
  0x77   :  { %1894 = vmatmul.mubr.bf16.gmra.mrb[24].mxu0 %v1988_v34  ;;  %1926 = vmatmul.mubr.bf16.gmra.mrb[24].mxu1 %v1989_v35 }
  0x78   :  { %1897 = vmatprep.mubr.bf16.mxu0 %v1990_v36  ;;  %1929 = vmatprep.mubr.bf16.mxu1 %v1991_v37 }
  0x7f   :  { %1898 = vmatmul.mubr.bf16.gmra.mrb[28].mxu0 %v1992_v38  ;;  %1930 = vmatmul.mubr.bf16.gmra.mrb[28].mxu1 %v1993_v39 }
 0x11a   :  { %v1871_v41 = vpop.f32.mrb[0].mxu0  ;;  %v1903_v42 = vpop.f32.mrb[0].mxu1 }
 0x11b   :  { %v989_v43 = vadd.f32 %v1871_v41, %v2124_v40  ;;  %v1021_v44 = vadd.f32 %v1903_v42, %v2124_v40  ;;  %v530_v45 = vpop.f32.mrb[1].mxu0  ;;  %v658_v46 = vpop.f32.mrb[1].mxu1 }
 0x11c   :  { %v987_v47 = vadd.f32 %v2124_v40, %v530_v45  ;;  %v1019_v48 = vadd.f32 %v2124_v40, %v658_v46  ;;  %v1872_v49 = vpop.f32.mrb[2].mxu0  ;;  %v1904_v50 = vpop.f32.mrb[2].mxu1 }
 0x11d   :  { %v990_v51 = vadd.f32 %v1872_v49, %v2124_v40  ;;  %v1022_v52 = vadd.f32 %v1904_v50, %v2124_v40  ;;  %v533_v53 = vpop.f32.mrb[3].mxu0  ;;  %v661_v54 = vpop.f32.mrb[3].mxu1  ;;  %v1053_v57 = vmax.f32 %v989_v43, 0.0  ;;  %v1085_v58 = vmax.f32 %v1021_v44, 0.0 }
 0x11e   :  { %v988_v55 = vadd.f32 %v2124_v40, %v533_v53  ;;  %v1020_v56 = vadd.f32 %v2124_v40, %v661_v54  ;;  %v1051_v61 = vmax.f32 %v987_v47, 0.0  ;;  %v1083_v62 = vmax.f32 %v1019_v48, 0.0 }
 0x11f   :  { %v1054_v59 = vmax.f32 %v990_v51, 0.0  ;;  %v1086_v60 = vmax.f32 %v1022_v52, 0.0 }
 0x120   :  { %v1052_v63 = vmax.f32 %v988_v55, 0.0  ;;  %v1084_v0 = vmax.f32 %v1020_v56, 0.0 }
 0x121   :  { %v1630_v1 = vpack.c.bf16 %v1054_v59, %v1053_v57  ;;  %v1710_v2 = vpack.c.bf16 %v1086_v60, %v1085_v58 }
 0x122   :  { %v1625_v3 = vpack.c.bf16 %v1052_v63, %v1051_v61  ;;  %v1705_v4 = vpack.c.bf16 %v1084_v0, %v1083_v62  ;;  %v1875_v5 = vpop.f32.mrb[4].mxu0  ;;  %v1907_v6 = vpop.f32.mrb[4].mxu1 }
 0x123   :  { %1782 = vst [vmem:[#allocation8 + $0x8] sm:$0xff] %v1630_v1   ;;  %1798 = vst [vmem:[#allocation8 + $0x88] sm:$0xff] %v1710_v2   ;;  %v993_v7 = vadd.f32 %v1875_v5, %v2124_v40  ;;  %v1025_v8 = vadd.f32 %v1907_v6, %v2124_v40  ;;  %v546_v9 = vpop.f32.mrb[5].mxu0  ;;  %v674_v10 = vpop.f32.mrb[5].mxu1 }
 0x124   :  { %1626 = vst [vmem:[#allocation8] sm:$0xff] %v1625_v3   ;;  %1797 = vst [vmem:[#allocation8 + $0x80] sm:$0xff] %v1705_v4   ;;  %v991_v11 = vadd.f32 %v2124_v40, %v546_v9  ;;  %v1023_v12 = vadd.f32 %v2124_v40, %v674_v10  ;;  %v1876_v13 = vpop.f32.mrb[6].mxu0  ;;  %v1908_v14 = vpop.f32.mrb[6].mxu1 }
 0x125   :  { %v994_v15 = vadd.f32 %v1876_v13, %v2124_v40  ;;  %v1026_v16 = vadd.f32 %v1908_v14, %v2124_v40  ;;  %v549_v17 = vpop.f32.mrb[7].mxu0  ;;  %v677_v18 = vpop.f32.mrb[7].mxu1  ;;  %v1057_v21 = vmax.f32 %v993_v7, 0.0  ;;  %v1089_v22 = vmax.f32 %v1025_v8, 0.0 }
 0x126   :  { %v992_v19 = vadd.f32 %v2124_v40, %v549_v17  ;;  %v1024_v20 = vadd.f32 %v2124_v40, %v677_v18  ;;  %v1055_v25 = vmax.f32 %v991_v11, 0.0  ;;  %v1087_v26 = vmax.f32 %v1023_v12, 0.0 }
 0x127   :  { %v1058_v23 = vmax.f32 %v994_v15, 0.0  ;;  %v1090_v24 = vmax.f32 %v1026_v16, 0.0 }
 0x128   :  { %v1056_v27 = vmax.f32 %v992_v19, 0.0  ;;  %v1088_v28 = vmax.f32 %v1024_v20, 0.0 }
 0x129   :  { %v1640_v29 = vpack.c.bf16 %v1058_v23, %v1057_v21  ;;  %v1720_v30 = vpack.c.bf16 %v1090_v24, %v1089_v22 }
 0x12a   :  { %v1635_v31 = vpack.c.bf16 %v1056_v27, %v1055_v25  ;;  %v1715_v32 = vpack.c.bf16 %v1088_v28, %v1087_v26  ;;  %v1879_v33 = vpop.f32.mrb[8].mxu0  ;;  %v1911_v34 = vpop.f32.mrb[8].mxu1 }
 0x12b   :  { %1784 = vst [vmem:[#allocation8 + $0x18] sm:$0xff] %v1640_v29   ;;  %1800 = vst [vmem:[#allocation8 + $0x98] sm:$0xff] %v1720_v30   ;;  %v997_v35 = vadd.f32 %v1879_v33, %v2124_v40  ;;  %v1029_v36 = vadd.f32 %v1911_v34, %v2124_v40  ;;  %v562_v37 = vpop.f32.mrb[9].mxu0  ;;  %v690_v38 = vpop.f32.mrb[9].mxu1 }
 0x12c   :  { %1783 = vst [vmem:[#allocation8 + $0x10] sm:$0xff] %v1635_v31   ;;  %1799 = vst [vmem:[#allocation8 + $0x90] sm:$0xff] %v1715_v32   ;;  %v995_v39 = vadd.f32 %v2124_v40, %v562_v37  ;;  %v1027_v41 = vadd.f32 %v2124_v40, %v690_v38  ;;  %v1880_v42 = vpop.f32.mrb[10].mxu0  ;;  %v1912_v43 = vpop.f32.mrb[10].mxu1 }
 0x12d   :  { %v998_v44 = vadd.f32 %v1880_v42, %v2124_v40  ;;  %v1030_v45 = vadd.f32 %v1912_v43, %v2124_v40  ;;  %v565_v46 = vpop.f32.mrb[11].mxu0  ;;  %v693_v47 = vpop.f32.mrb[11].mxu1  ;;  %v1061_v50 = vmax.f32 %v997_v35, 0.0  ;;  %v1093_v51 = vmax.f32 %v1029_v36, 0.0 }
 0x12e   :  { %v996_v48 = vadd.f32 %v2124_v40, %v565_v46  ;;  %v1028_v49 = vadd.f32 %v2124_v40, %v693_v47  ;;  %v1059_v54 = vmax.f32 %v995_v39, 0.0  ;;  %v1091_v55 = vmax.f32 %v1027_v41, 0.0 }
 0x12f   :  { %v1062_v52 = vmax.f32 %v998_v44, 0.0  ;;  %v1094_v53 = vmax.f32 %v1030_v45, 0.0 }
 0x130   :  { %v1060_v56 = vmax.f32 %v996_v48, 0.0  ;;  %v1092_v57 = vmax.f32 %v1028_v49, 0.0 }
 0x131   :  { %v1650_v58 = vpack.c.bf16 %v1062_v52, %v1061_v50  ;;  %v1730_v59 = vpack.c.bf16 %v1094_v53, %v1093_v51 }
 0x132   :  { %v1645_v60 = vpack.c.bf16 %v1060_v56, %v1059_v54  ;;  %v1725_v61 = vpack.c.bf16 %v1092_v57, %v1091_v55  ;;  %v1883_v62 = vpop.f32.mrb[12].mxu0  ;;  %v1915_v63 = vpop.f32.mrb[12].mxu1 }
 0x133   :  { %1786 = vst [vmem:[#allocation8 + $0x28] sm:$0xff] %v1650_v58   ;;  %1802 = vst [vmem:[#allocation8 + $0xa8] sm:$0xff] %v1730_v59   ;;  %v1001_v0 = vadd.f32 %v1883_v62, %v2124_v40  ;;  %v1033_v1 = vadd.f32 %v1915_v63, %v2124_v40  ;;  %v578_v2 = vpop.f32.mrb[13].mxu0  ;;  %v706_v3 = vpop.f32.mrb[13].mxu1 }
 0x134   :  { %1785 = vst [vmem:[#allocation8 + $0x20] sm:$0xff] %v1645_v60   ;;  %1801 = vst [vmem:[#allocation8 + $0xa0] sm:$0xff] %v1725_v61   ;;  %v999_v4 = vadd.f32 %v2124_v40, %v578_v2  ;;  %v1031_v5 = vadd.f32 %v2124_v40, %v706_v3  ;;  %v1884_v6 = vpop.f32.mrb[14].mxu0  ;;  %v1916_v7 = vpop.f32.mrb[14].mxu1 }
 0x135   :  { %v1002_v8 = vadd.f32 %v1884_v6, %v2124_v40  ;;  %v1034_v9 = vadd.f32 %v1916_v7, %v2124_v40  ;;  %v581_v10 = vpop.f32.mrb[15].mxu0  ;;  %v709_v11 = vpop.f32.mrb[15].mxu1  ;;  %v1065_v14 = vmax.f32 %v1001_v0, 0.0  ;;  %v1097_v15 = vmax.f32 %v1033_v1, 0.0 }
 0x136   :  { %v1000_v12 = vadd.f32 %v2124_v40, %v581_v10  ;;  %v1032_v13 = vadd.f32 %v2124_v40, %v709_v11  ;;  %v1063_v18 = vmax.f32 %v999_v4, 0.0  ;;  %v1095_v19 = vmax.f32 %v1031_v5, 0.0 }
 0x137   :  { %v1066_v16 = vmax.f32 %v1002_v8, 0.0  ;;  %v1098_v17 = vmax.f32 %v1034_v9, 0.0 }
 0x138   :  { %v1064_v20 = vmax.f32 %v1000_v12, 0.0  ;;  %v1096_v21 = vmax.f32 %v1032_v13, 0.0 }
 0x139   :  { %v1660_v22 = vpack.c.bf16 %v1066_v16, %v1065_v14  ;;  %v1740_v23 = vpack.c.bf16 %v1098_v17, %v1097_v15 }
 0x13a   :  { %v1655_v24 = vpack.c.bf16 %v1064_v20, %v1063_v18  ;;  %v1735_v25 = vpack.c.bf16 %v1096_v21, %v1095_v19  ;;  %v1887_v26 = vpop.f32.mrb[16].mxu0  ;;  %v1919_v27 = vpop.f32.mrb[16].mxu1 }
 0x13b   :  { %1788 = vst [vmem:[#allocation8 + $0x38] sm:$0xff] %v1660_v22   ;;  %1804 = vst [vmem:[#allocation8 + $0xb8] sm:$0xff] %v1740_v23   ;;  %v1005_v28 = vadd.f32 %v1887_v26, %v2124_v40  ;;  %v1037_v29 = vadd.f32 %v1919_v27, %v2124_v40  ;;  %v594_v30 = vpop.f32.mrb[17].mxu0  ;;  %v722_v31 = vpop.f32.mrb[17].mxu1 }
 0x13c   :  { %1787 = vst [vmem:[#allocation8 + $0x30] sm:$0xff] %v1655_v24   ;;  %1803 = vst [vmem:[#allocation8 + $0xb0] sm:$0xff] %v1735_v25   ;;  %v1003_v32 = vadd.f32 %v2124_v40, %v594_v30  ;;  %v1035_v33 = vadd.f32 %v2124_v40, %v722_v31  ;;  %v1888_v34 = vpop.f32.mrb[18].mxu0  ;;  %v1920_v35 = vpop.f32.mrb[18].mxu1 }
 0x13d   :  { %v1006_v36 = vadd.f32 %v1888_v34, %v2124_v40  ;;  %v1038_v37 = vadd.f32 %v1920_v35, %v2124_v40  ;;  %v597_v38 = vpop.f32.mrb[19].mxu0  ;;  %v725_v39 = vpop.f32.mrb[19].mxu1  ;;  %v1069_v43 = vmax.f32 %v1005_v28, 0.0  ;;  %v1101_v44 = vmax.f32 %v1037_v29, 0.0 }
 0x13e   :  { %v1004_v41 = vadd.f32 %v2124_v40, %v597_v38  ;;  %v1036_v42 = vadd.f32 %v2124_v40, %v725_v39  ;;  %v1067_v47 = vmax.f32 %v1003_v32, 0.0  ;;  %v1099_v48 = vmax.f32 %v1035_v33, 0.0 }
 0x13f   :  { %v1070_v45 = vmax.f32 %v1006_v36, 0.0  ;;  %v1102_v46 = vmax.f32 %v1038_v37, 0.0 }
 0x140   :  { %v1068_v49 = vmax.f32 %v1004_v41, 0.0  ;;  %v1100_v50 = vmax.f32 %v1036_v42, 0.0 }
 0x141   :  { %v1670_v51 = vpack.c.bf16 %v1070_v45, %v1069_v43  ;;  %v1750_v52 = vpack.c.bf16 %v1102_v46, %v1101_v44 }
 0x142   :  { %v1665_v53 = vpack.c.bf16 %v1068_v49, %v1067_v47  ;;  %v1745_v54 = vpack.c.bf16 %v1100_v50, %v1099_v48  ;;  %v1891_v55 = vpop.f32.mrb[20].mxu0  ;;  %v1923_v56 = vpop.f32.mrb[20].mxu1 }
 0x143   :  { %1790 = vst [vmem:[#allocation8 + $0x48] sm:$0xff] %v1670_v51   ;;  %1806 = vst [vmem:[#allocation8 + $0xc8] sm:$0xff] %v1750_v52   ;;  %v1009_v57 = vadd.f32 %v1891_v55, %v2124_v40  ;;  %v1041_v58 = vadd.f32 %v1923_v56, %v2124_v40  ;;  %v610_v59 = vpop.f32.mrb[21].mxu0  ;;  %v738_v60 = vpop.f32.mrb[21].mxu1 }
 0x144   :  { %1789 = vst [vmem:[#allocation8 + $0x40] sm:$0xff] %v1665_v53   ;;  %1805 = vst [vmem:[#allocation8 + $0xc0] sm:$0xff] %v1745_v54   ;;  %v1007_v61 = vadd.f32 %v2124_v40, %v610_v59  ;;  %v1039_v62 = vadd.f32 %v2124_v40, %v738_v60  ;;  %v1892_v63 = vpop.f32.mrb[22].mxu0  ;;  %v1924_v0 = vpop.f32.mrb[22].mxu1 }
 0x145   :  { %v1010_v1 = vadd.f32 %v1892_v63, %v2124_v40  ;;  %v1042_v2 = vadd.f32 %v1924_v0, %v2124_v40  ;;  %v613_v3 = vpop.f32.mrb[23].mxu0  ;;  %v741_v4 = vpop.f32.mrb[23].mxu1  ;;  %v1073_v7 = vmax.f32 %v1009_v57, 0.0  ;;  %v1105_v8 = vmax.f32 %v1041_v58, 0.0 }
 0x146   :  { %v1008_v5 = vadd.f32 %v2124_v40, %v613_v3  ;;  %v1040_v6 = vadd.f32 %v2124_v40, %v741_v4  ;;  %v1071_v11 = vmax.f32 %v1007_v61, 0.0  ;;  %v1103_v12 = vmax.f32 %v1039_v62, 0.0 }
 0x147   :  { %v1074_v9 = vmax.f32 %v1010_v1, 0.0  ;;  %v1106_v10 = vmax.f32 %v1042_v2, 0.0 }
 0x148   :  { %v1072_v13 = vmax.f32 %v1008_v5, 0.0  ;;  %v1104_v14 = vmax.f32 %v1040_v6, 0.0 }
 0x149   :  { %v1680_v15 = vpack.c.bf16 %v1074_v9, %v1073_v7  ;;  %v1760_v16 = vpack.c.bf16 %v1106_v10, %v1105_v8 }
 0x14a   :  { %v1675_v17 = vpack.c.bf16 %v1072_v13, %v1071_v11  ;;  %v1755_v18 = vpack.c.bf16 %v1104_v14, %v1103_v12  ;;  %v1895_v19 = vpop.f32.mrb[24].mxu0  ;;  %v1927_v20 = vpop.f32.mrb[24].mxu1 }
 0x14b   :  { %1792 = vst [vmem:[#allocation8 + $0x58] sm:$0xff] %v1680_v15   ;;  %1808 = vst [vmem:[#allocation8 + $0xd8] sm:$0xff] %v1760_v16   ;;  %v1013_v21 = vadd.f32 %v1895_v19, %v2124_v40  ;;  %v1045_v22 = vadd.f32 %v1927_v20, %v2124_v40  ;;  %v626_v23 = vpop.f32.mrb[25].mxu0  ;;  %v754_v24 = vpop.f32.mrb[25].mxu1 }
 0x14c   :  { %1791 = vst [vmem:[#allocation8 + $0x50] sm:$0xff] %v1675_v17   ;;  %1807 = vst [vmem:[#allocation8 + $0xd0] sm:$0xff] %v1755_v18   ;;  %v1011_v25 = vadd.f32 %v2124_v40, %v626_v23  ;;  %v1043_v26 = vadd.f32 %v2124_v40, %v754_v24  ;;  %v1896_v27 = vpop.f32.mrb[26].mxu0  ;;  %v1928_v28 = vpop.f32.mrb[26].mxu1 }
 0x14d   :  { %v1014_v29 = vadd.f32 %v1896_v27, %v2124_v40  ;;  %v1046_v30 = vadd.f32 %v1928_v28, %v2124_v40  ;;  %v629_v31 = vpop.f32.mrb[27].mxu0  ;;  %v757_v32 = vpop.f32.mrb[27].mxu1  ;;  %v1077_v35 = vmax.f32 %v1013_v21, 0.0  ;;  %v1109_v36 = vmax.f32 %v1045_v22, 0.0 }
 0x14e   :  { %v1012_v33 = vadd.f32 %v2124_v40, %v629_v31  ;;  %v1044_v34 = vadd.f32 %v2124_v40, %v757_v32  ;;  %v1075_v39 = vmax.f32 %v1011_v25, 0.0  ;;  %v1107_v41 = vmax.f32 %v1043_v26, 0.0 }
 0x14f   :  { %v1078_v37 = vmax.f32 %v1014_v29, 0.0  ;;  %v1110_v38 = vmax.f32 %v1046_v30, 0.0 }
 0x150   :  { %v1076_v42 = vmax.f32 %v1012_v33, 0.0  ;;  %v1108_v43 = vmax.f32 %v1044_v34, 0.0 }
 0x151   :  { %v1690_v44 = vpack.c.bf16 %v1078_v37, %v1077_v35  ;;  %v1770_v45 = vpack.c.bf16 %v1110_v38, %v1109_v36 }
 0x152   :  { %v1685_v46 = vpack.c.bf16 %v1076_v42, %v1075_v39  ;;  %v1765_v47 = vpack.c.bf16 %v1108_v43, %v1107_v41  ;;  %v1899_v48 = vpop.f32.mrb[28].mxu0  ;;  %v1931_v49 = vpop.f32.mrb[28].mxu1 }
 0x153   :  { %1794 = vst [vmem:[#allocation8 + $0x68] sm:$0xff] %v1690_v44   ;;  %1810 = vst [vmem:[#allocation8 + $0xe8] sm:$0xff] %v1770_v45   ;;  %v1017_v50 = vadd.f32 %v1899_v48, %v2124_v40  ;;  %v1049_v51 = vadd.f32 %v1931_v49, %v2124_v40  ;;  %v642_v52 = vpop.f32.mrb[29].mxu0  ;;  %v770_v53 = vpop.f32.mrb[29].mxu1 }
 0x154   :  { %1793 = vst [vmem:[#allocation8 + $0x60] sm:$0xff] %v1685_v46   ;;  %1809 = vst [vmem:[#allocation8 + $0xe0] sm:$0xff] %v1765_v47   ;;  %v1015_v54 = vadd.f32 %v2124_v40, %v642_v52  ;;  %v1047_v55 = vadd.f32 %v2124_v40, %v770_v53  ;;  %v1900_v56 = vpop.f32.mrb[30].mxu0  ;;  %v1932_v57 = vpop.f32.mrb[30].mxu1 }
 0x155   :  { %v1018_v58 = vadd.f32 %v1900_v56, %v2124_v40  ;;  %v1050_v59 = vadd.f32 %v1932_v57, %v2124_v40  ;;  %v645_v60 = vpop.f32.mrb[31].mxu0  ;;  %v773_v61 = vpop.f32.mrb[31].mxu1  ;;  %v1081_v0 = vmax.f32 %v1017_v50, 0.0  ;;  %v1113_v1 = vmax.f32 %v1049_v51, 0.0 }
 0x156   :  { %v1016_v62 = vadd.f32 %v2124_v40, %v645_v60  ;;  %v1048_v63 = vadd.f32 %v2124_v40, %v773_v61  ;;  %v1079_v4 = vmax.f32 %v1015_v54, 0.0  ;;  %v1111_v5 = vmax.f32 %v1047_v55, 0.0 }
 0x157   :  { %v1082_v2 = vmax.f32 %v1018_v58, 0.0  ;;  %v1114_v3 = vmax.f32 %v1050_v59, 0.0 }
 0x158   :  { %v1080_v6 = vmax.f32 %v1016_v62, 0.0  ;;  %v1112_v7 = vmax.f32 %v1048_v63, 0.0 }
 0x159   :  { %v1700_v8 = vpack.c.bf16 %v1082_v2, %v1081_v0  ;;  %v1780_v9 = vpack.c.bf16 %v1114_v3, %v1113_v1 }
 0x15a   :  { %v1695_v10 = vpack.c.bf16 %v1080_v6, %v1079_v4  ;;  %v1775_v11 = vpack.c.bf16 %v1112_v7, %v1111_v5 }
 0x15b   :  { %1796 = vst [vmem:[#allocation8 + $0x78] sm:$0xff] %v1700_v8   ;;  %1812 = vst [vmem:[#allocation8 + $0xf8] sm:$0xff] %v1780_v9  }
 0x15c   :  { %1795 = vst [vmem:[#allocation8 + $0x70] sm:$0xff] %v1695_v10   ;;  %1811 = vst [vmem:[#allocation8 + $0xf0] sm:$0xff] %v1775_v11  }
 0x15d   :  { %2049 = shalt.err (!%p2046_p6)
}
 0x15e   :  { %s2050_s15 = scalar_lea.hbm %s2208_s3, 4096 }
 0x15f   :  { %p2051_p7 = scmp.ne.s32.totalorder %s2208_s3, %s2050_s15  ;;  %p2054_p8 = scmp.lt.u32.totalorder %s2050_s15, %s2208_s3 }
 0x161   :  { %p2056_p9 = pnand %p2054_p8, %p2051_p7 }
 0x163   :  { %2059 = shalt.err (!%p2056_p9)
}
 0x164   :  { %1446 = dma.vmem_to_hbm [thread:$0]  %s1441_s11, 4096, %s2208_s3, [#allocation5], %s2067_s22, %s2067_s22, %s2068_s23  }
 0x165   :  { %2064 = dma.done.wait [#allocation5], 4096  }
 0x166   :  { %2065 = vsyncadd [#allocation5], 4294963200 }
 0x167   :  { %1450 = vsyncpa [#allocation4], 1 }
 0x168   :  { %1451 = vsyncpa [#allocation7], 1 }
 0x169   :  { %1452 = vsyncpa [#allocation5], 1 }

</bundles_post_ra>
